<compile_context>
chip_gen: v7x
topology: tpu7x:2x2x1
jax: 0.10.0
libtpu: 0.0.40
codegen_flags: <defaults>
</compile_context>

<pallas_src>
import functools

import jax
import jax.numpy as jnp
from jax.experimental import pallas as pl
from jax.experimental.pallas import tpu as pltpu

_LANES = 128
_SINGLE_TC_TILE_BYTES = 1 << 20   # ~1 MiB tiles on v5e / v6e (single TensorCore)
_DUAL_TC_TILE_BYTES = 2 << 20     # ~2 MiB tiles on v7x (2 TensorCores, 3.2 TB/s)


def _round_up(x: int, m: int) -> int:
    return ((x + m - 1) // m) * m


def _sublane(dtype) -> int:
    """Minimum sublane tiling for this dtype: 8 (4B), 16 (2B), 32 (1B)."""
    itemsize = jnp.dtype(dtype).itemsize
    return max(8, 32 // itemsize)


def _num_tensorcores() -> int:
    """2 on v7x-class chips (megacore-style grid sharding), else 1."""
    try:
        kind = jax.devices()[0].device_kind.lower()
    except Exception:
        return 1
    return 2 if ("v7" in kind or "7x" in kind) else 1


def _choose_block_m(rows: int, sublane: int, target_block_m: int, num_tc: int) -> int:
    """Row tile: big (HBM-roofline plateau), sublane-aligned, balanced across TCs."""
    bm = max(sublane, min(_round_up(target_block_m, sublane),
                          _round_up(rows, sublane)))
    if num_tc >= 2:
        steps = -(-rows // bm)
        min_steps = 2 * num_tc                      # >= 2 pipelined steps per core
        if rows >= min_steps * sublane and (steps < min_steps or steps % num_tc):
            desired = _round_up(max(steps, min_steps), num_tc)
            bm = max(sublane, _round_up(-(-rows // desired), sublane))
    return bm


def _linreg_kernel(w_ref, b_ref, x_ref, o_ref):
    # w_ref, b_ref: SMEM refs of shape (1,) holding the f32 scalar parameters.
    # x_ref, o_ref: lane-dense VMEM tiles of shape (block_m, 128).
    w = w_ref[0].astype(o_ref.dtype)
    b = b_ref[0].astype(o_ref.dtype)
    o_ref[...] = (w * x_ref[...] + b).astype(o_ref.dtype)


@functools.partial(jax.jit, static_argnames=("target_tile_bytes",))
def linear_regression_forward(x: jax.Array, weights: jax.Array, bias: jax.Array,
                              *, target_tile_bytes: int | None = None) -> jax.Array:
    """y = weights * x + bias for any-shaped x. Output dtype matches x."""
    orig_shape = x.shape
    dtype = x.dtype
    itemsize = jnp.dtype(dtype).itemsize
    sublane = _sublane(dtype)
    num_tc = _num_tensorcores()

    if target_tile_bytes is None:
        target_tile_bytes = _DUAL_TC_TILE_BYTES if num_tc >= 2 else _SINGLE_TC_TILE_BYTES
    target_block_m = max(sublane, target_tile_bytes // (_LANES * itemsize))

    # Scalar parameters: accept () or (1,), keep f32 (matches torch promotion).
    w = jnp.asarray(weights, jnp.float32).reshape(1)
    b = jnp.asarray(bias, jnp.float32).reshape(1)

    flat = x.reshape(-1)
    n = flat.shape[0]

    # Pad only to the minimum tile granularity; skip pad + tail slice when aligned.
    granularity = sublane * _LANES
    padded_n = _round_up(n, granularity)
    padded = padded_n != n
    if padded:
        flat = jnp.pad(flat, (0, padded_n - n))

    rows = padded_n // _LANES
    block_m = _choose_block_m(rows, sublane, target_block_m, num_tc)
    grid_m = pl.cdiv(rows, block_m)

    x2 = flat.reshape(rows, _LANES)

    y2 = pl.pallas_call(
        _linreg_kernel,
        out_shape=jax.ShapeDtypeStruct((rows, _LANES), dtype),
        grid_spec=pl.GridSpec(
            grid=(grid_m,),
            in_specs=[
                pl.BlockSpec(memory_space=pltpu.SMEM),              # weights (1,)
                pl.BlockSpec(memory_space=pltpu.SMEM),              # bias    (1,)
                pl.BlockSpec((block_m, _LANES), lambda i: (i, 0)),  # x tile
            ],
            out_specs=pl.BlockSpec((block_m, _LANES), lambda i: (i, 0)),
        ),
        compiler_params=pltpu.CompilerParams(
            dimension_semantics=("parallel",)),
        cost_estimate=pl.CostEstimate(
            flops=2 * padded_n,
            transcendentals=0,
            bytes_accessed=2 * padded_n * itemsize),
    )(w, b, x2)

    y = y2.reshape(-1)
    if padded:
        y = y[:n]
    return y.reshape(orig_shape)


if __name__ == "__main__":
    key = jax.random.PRNGKey(0)
    k_w, k_b, k_x1, k_x2, k_x3 = jax.random.split(key, 5)

    # Parameters matching nn.Parameter(torch.rand(1)) shapes.
    weights = jax.random.uniform(k_w, (1,), dtype=jnp.float32)
    bias = jax.random.uniform(k_b, (1,), dtype=jnp.float32)

    # Tutorial-style (N, 1) float32 input: exercises the pad + tail-slice path.
    x_small = jax.random.uniform(k_x1, (50, 1), dtype=jnp.float32)
    y_small = jax.block_until_ready(linear_regression_forward(x_small, weights, bias))
    ref_small = weights * x_small + bias
    assert y_small.shape == x_small.shape and y_small.dtype == x_small.dtype
    assert jnp.allclose(y_small, ref_small, atol=1e-6, rtol=1e-6)

    # Larger, already lane-aligned input: no pad / no slice, multi-step grid.
    x_big = jax.random.uniform(k_x2, (4096, 128), dtype=jnp.float32)
    y_big = jax.block_until_ready(linear_regression_forward(x_big, weights, bias))
    ref_big = weights * x_big + bias
    assert y_big.shape == x_big.shape and y_big.dtype == x_big.dtype
    assert jnp.allclose(y_big, ref_big, atol=1e-6, rtol=1e-6)

    # bf16 input: exercises dtype-aware sublane tiling and the in-kernel cast.
    x_bf16 = jax.random.uniform(k_x3, (256, 128), dtype=jnp.float32).astype(jnp.bfloat16)
    y_bf16 = jax.block_until_ready(linear_regression_forward(x_bf16, weights, bias))
    ref_bf16 = weights * x_bf16.astype(jnp.float32) + bias
    assert y_bf16.shape == x_bf16.shape and y_bf16.dtype == jnp.bfloat16
    assert jnp.allclose(y_bf16.astype(jnp.float32), ref_bf16, atol=5e-2, rtol=5e-2)

    print("KERNEL_OK")
</pallas_src>

<mosaic_0001>
module attributes {stable_mosaic.version = 11 : i64} {
  func.func @_linreg_kernel(%arg0: i32, %arg1: memref<1xf32, #tpu.memory_space<smem>>, %arg2: memref<1xf32, #tpu.memory_space<smem>>, %arg3: memref<8x128xf32, #tpu.memory_space<vmem>>, %arg4: memref<8x128xf32, #tpu.memory_space<vmem>>) attributes {dimension_semantics = [#tpu.dimension_semantics<parallel>], iteration_bounds = array<i64: 1>, scalar_prefetch = 0 : i64, scratch_operands = 0 : i64, tpu.core_type = #tpu.core_type<tc>, window_params = [{transform_indices = @transform_0, window_bounds = array<i64: 1>}, {transform_indices = @transform_1, window_bounds = array<i64: 1>}, {transform_indices = @transform_2, window_bounds = array<i64: 8, 128>}, {transform_indices = @transform_3, window_bounds = array<i64: 8, 128>}]} {
    %c0 = arith.constant 0 : index
    %0 = memref.load %arg1[%c0] : memref<1xf32, #tpu.memory_space<smem>>
    %c0_0 = arith.constant 0 : index
    %1 = memref.load %arg2[%c0_0] : memref<1xf32, #tpu.memory_space<smem>>
    %c0_1 = arith.constant 0 : index
    %c0_2 = arith.constant 0 : index
    %2 = vector.load %arg3[%c0_1, %c0_2] : memref<8x128xf32, #tpu.memory_space<vmem>>, vector<8x128xf32>
    %3 = vector.broadcast %0 : f32 to vector<8x128xf32>
    %4 = arith.mulf %3, %2 : vector<8x128xf32>
    %5 = vector.broadcast %1 : f32 to vector<8x128xf32>
    %6 = arith.addf %4, %5 : vector<8x128xf32>
    %c0_3 = arith.constant 0 : index
    %c0_4 = arith.constant 0 : index
    %7 = vector.load %arg4[%c0_3, %c0_4] : memref<8x128xf32, #tpu.memory_space<vmem>>, vector<8x128xf32>
    tpu.vector_store %arg4[%c0_3, %c0_4], %6 {strides = array<i32>} : memref<8x128xf32, #tpu.memory_space<vmem>>, vector<8x128xf32>,
    return
  }
  func.func @transform_0(%arg0: i32) -> i32 {
    %c0_i32 = arith.constant 0 : i32
    %c0_i32_0 = arith.constant 0 : i32
    return %c0_i32 : i32
  }
  func.func @transform_1(%arg0: i32) -> i32 {
    %c0_i32 = arith.constant 0 : i32
    %c0_i32_0 = arith.constant 0 : i32
    return %c0_i32 : i32
  }
  func.func @transform_2(%arg0: i32) -> (i32, i32) {
    %c0_i32 = arith.constant 0 : i32
    %c0_i32_0 = arith.constant 0 : i32
    return %arg0, %c0_i32 : i32, i32
  }
  func.func @transform_3(%arg0: i32) -> (i32, i32) {
    %c0_i32 = arith.constant 0 : i32
    %c0_i32_0 = arith.constant 0 : i32
    return %arg0, %c0_i32 : i32, i32
  }
}

</mosaic_0001>

<bundles_post_ra>
// kernel: linear_regression_forward.1
= control target key start
LH: loop header
LB: loop body
LE: loop exit
PB: predicated region body
PF: predicated region fallthrough
CT: control target
= control target key end

     0   :  { %s60_s0 = inlined_call_operand.<no memory space> [shape: f32[1], index: 0, kind: input, shape index: {}]   ;;  %s61_s1 = inlined_call_operand.<no memory space> [shape: f32[1], index: 1, kind: input, shape index: {}]   ;;  %s62_s2 = inlined_call_operand.vmem [shape: f32[8,128], index: 2, kind: input, shape index: {}]   ;;  %s63_s3 = inlined_call_operand.vmem [shape: f32[8,128], index: 3, kind: output, shape index: {}]  }
   0x1   :  { %v18_v0 = vld [vmem:[%s62_s2] sm:$0xff]  ;;  %v19_v1 = vstv %s60_s0  ;;  %v21_v2 = vstv %s61_s1 }
   0x2   :  { %v20_v3 = vmul.f32 %v19_v1, %v18_v0 }
   0x4   :  { %v22_v4 = vadd.f32 %v21_v2, %v20_v3 }
   0x6   :  { %23 = vst [vmem:[%s63_s3] sm:$0xff] %v22_v4 }

</bundles_post_ra>
